<compile_context>
chip_gen: v5e
topology: v5e:2x2
jax: 0.10.0
libtpu: 0.0.40
codegen_flags: <defaults>
</compile_context>

<pallas_src>
import jax
import jax.numpy as jnp
from jax import lax
from jax.experimental import pallas as pl
from jax.experimental.pallas import tpu as pltpu


def _einsum_add_kernel(inp_ref, x1_ref, x2_ref, o_ref):
    # einsum('ab,ac->bc'): contract dim 0 of both operands on the MXU,
    # f32 accumulation.  No wrapper-side transpose needed.
    v1 = lax.dot_general(
        inp_ref[...],
        x1_ref[...],
        dimension_numbers=(((0,), (0,)), ((), ())),
        preferred_element_type=jnp.float32,
    )
    o_ref[...] = (v1 + x2_ref[...]).astype(o_ref.dtype)


def einsum_add(inp, x1, x2):
    """einsum('ab,ac->bc', inp, x1) + x2 as a single Pallas TPU kernel call."""
    A, B = inp.shape
    A2, C = x1.shape
    assert A == A2, "contraction dim mismatch"
    assert x2.shape == (B, C), "x2 must match einsum output shape"

    out_dtype = jnp.result_type(inp, x1, x2)

    vmem_spec = pl.BlockSpec(memory_space=pltpu.MemorySpace.VMEM)

    cost = pl.CostEstimate(
        flops=2 * A * B * C,
        transcendentals=0,
        bytes_accessed=jnp.dtype(out_dtype).itemsize * (A * B + A * C + 2 * B * C),
    )

    # No grid: one invocation, whole (tiny) arrays resident in VMEM.
    return pl.pallas_call(
        _einsum_add_kernel,
        out_shape=jax.ShapeDtypeStruct((B, C), out_dtype),
        in_specs=[vmem_spec, vmem_spec, vmem_spec],
        out_specs=vmem_spec,
        cost_estimate=cost,
    )(inp, x1, x2)


if __name__ == "__main__":
    key = jax.random.PRNGKey(0)
    k_inp, k_x1, k_x2 = jax.random.split(key, 3)

    A, B, C = 12, 6, 6
    inp = jax.random.normal(k_inp, (A, B), dtype=jnp.float32)
    x1 = jax.random.normal(k_x1, (A, C), dtype=jnp.float32)
    x2 = jax.random.normal(k_x2, (B, C), dtype=jnp.float32)

    out = einsum_add(inp, x1, x2)
    out = jax.block_until_ready(out)

    # Reference check in plain JAX.
    ref = jnp.einsum("ab,ac->bc", inp, x1) + x2
    assert out.shape == (B, C)
    assert jnp.allclose(out, ref, atol=1e-5, rtol=1e-5)

    print("KERNEL_OK")
</pallas_src>

<mosaic_0001>
module attributes {stable_mosaic.version = 11 : i64} {
  func.func @_einsum_add_kernel(%arg0: memref<12x6xf32, #tpu.memory_space<vmem>>, %arg1: memref<12x6xf32, #tpu.memory_space<vmem>>, %arg2: memref<6x6xf32, #tpu.memory_space<vmem>>, %arg3: memref<6x6xf32, #tpu.memory_space<vmem>>) attributes {dimension_semantics = [], scalar_prefetch = 0 : i64, scratch_operands = 0 : i64, tpu.core_type = #tpu.core_type<tc>} {
    %c0 = arith.constant 0 : index
    %c0_0 = arith.constant 0 : index
    %0 = vector.load %arg0[%c0, %c0_0] : memref<12x6xf32, #tpu.memory_space<vmem>>, vector<12x6xf32>
    %c0_1 = arith.constant 0 : index
    %c0_2 = arith.constant 0 : index
    %1 = vector.load %arg1[%c0_1, %c0_2] : memref<12x6xf32, #tpu.memory_space<vmem>>, vector<12x6xf32>
    %cst = arith.constant dense<0.000000e+00> : vector<6x6xf32>
    %2 = tpu.matmul %0, %1, %cst {dimension_numbers = #tpu.dot_dimension_numbers<[0], [0], [1], [1], [0, 1, 1, 1], [], []>} : vector<12x6xf32>, vector<12x6xf32>, vector<6x6xf32> -> vector<6x6xf32>
    %c0_3 = arith.constant 0 : index
    %c0_4 = arith.constant 0 : index
    %3 = vector.load %arg2[%c0_3, %c0_4] : memref<6x6xf32, #tpu.memory_space<vmem>>, vector<6x6xf32>
    %4 = arith.addf %2, %3 : vector<6x6xf32>
    %c0_5 = arith.constant 0 : index
    %c0_6 = arith.constant 0 : index
    %5 = vector.load %arg3[%c0_5, %c0_6] : memref<6x6xf32, #tpu.memory_space<vmem>>, vector<6x6xf32>
    tpu.vector_store %arg3[%c0_5, %c0_6], %4 {strides = array<i32>} : memref<6x6xf32, #tpu.memory_space<vmem>>, vector<6x6xf32>,
    return
  }
}

</mosaic_0001>

<bundles_post_ra>
// kernel: tpu_custom_call.1
= control target key start
LH: loop header
LB: loop body
LE: loop exit
PB: predicated region body
PF: predicated region fallthrough
CT: control target
= control target key end

     0   :  { %vm56_vm0 = vcmask 1043456   ;;  %s167_s0 = inlined_call_operand.vmem [shape: f32[12,6], index: 0, kind: input, shape index: {}]   ;;  %s168_s1 = inlined_call_operand.vmem [shape: f32[12,6], index: 1, kind: input, shape index: {}]   ;;  %s169_s2 = inlined_call_operand.vmem [shape: f32[6,6], index: 2, kind: input, shape index: {}]   ;;  %s170_s3 = inlined_call_operand.hbm [shape: f32[6,6], index: 3, kind: output, shape index: {}]  }
   0x1   :  { %v15_v0 = vld [vmem:[%s167_s0] sm:$0xff]  ;;  %v18_v1 = vld [vmem:[%s168_s1 + $0x8] sm:$0xf] }
   0x2   :  { %20 = vxpose.xlu0.b32.start [1/2] (short) (narrow) %v15_v0, 8  ;;  %v17_v2 = vld [vmem:[%s168_s1] sm:$0xff] }
   0x3   :  { %8 = vsyncpa [#allocation3], 0  ;;  %98 = vmatpush.msk.msra.mxu0 %vm56_vm0, %v18_v1  ;;  %v16_v3 = vld [vmem:[%s167_s0 + $0x8] sm:$0xf]  ;;  %vm52_vm1 = vcmask 97280   ;;  %s128_s22 = smov [#allocation2]  }
   0x4   :  { %v19_v5 = vld [vmem:[%s169_s2] sm:$0x3f]  ;;  %s87_s23 = sshll.u32 %s128_s22, 4  ;;  %s89_s1 = sshll.u32 %s170_s3, 4  ;;  %vm80_vm2 = vcmask 46080   ;;  %s88_s23 = int_to_ptr.vmem [resolvable:$true] %s87_s23  ;;  %s90_s1 = int_to_ptr.hbm [resolvable:$true] %s89_s1 }
   0x5   :  { %75 = vmatpush.msra.mxu0 %v17_v2 }
   0xa   :  { %21 = vxpose.xlu0.b32.end [2/2] (short) (narrow) %v16_v3, 8 }
  0xa6   :  { %v36_v4 = vpop.trf.xlu0 }
  0xa7   :  { %99 = vmatmul.msk.f32.vlgmr.msra.gmra.mxu0 %vm52_vm1, %v36_v4 }
 0x124   :  { %v77_v6 = vpop.f32.mrf.mxu0 }
 0x125   :  { %v78_v7 = vadd.f32 %v77_v6, %v19_v5 }
 0x127   :  { %81 = vst.msk [vmem:[#allocation2] sm:$0x3f] %vm80_vm2, %v78_v7 }
 0x128   :  { %92 = dma.vmem_to_hbm [thread:$0]  %s88_s23, 128, %s90_s1, [#allocation3]  }
 0x129   :  { %126 = dma.done.wait [#allocation3], 128  }
 0x12a   :  { %127 = vsyncadd [#allocation3], 4294967168 }
 0x12b   :  { %97 = vsyncpa [#allocation3], 1 }

</bundles_post_ra>
